<compile_context>
chip_gen: v5e
topology: v5e:2x2
jax: 0.10.0
libtpu: 0.0.40
codegen_flags: <defaults>
</compile_context>

<pallas_src>
import functools
import math
import warnings

import jax
import jax.numpy as jnp
from jax.experimental import pallas as pl
from jax.experimental.pallas import tpu as pltpu


_EPS = 1e-5


def _ln(x, g, b):
    mu = jnp.mean(x, axis=-1, keepdims=True)
    var = jnp.mean((x - mu) ** 2, axis=-1, keepdims=True)
    return (x - mu) * jax.lax.rsqrt(var + _EPS) * g + b


# --------------------------------------------------------------------------
# Stage 1: LayerNorm1 + QKV projection (one row-tile of one batch element).
# --------------------------------------------------------------------------
def ln1_qkv_kernel(x_ref, g_ref, b_ref, wqkv_ref, qkv_ref):
    x = x_ref[0].astype(jnp.float32)                           # (T, C)
    xn = _ln(x, g_ref[0], b_ref[0])
    qkv = jnp.dot(xn.astype(jnp.bfloat16), wqkv_ref[...],
                  preferred_element_type=jnp.float32)          # (T, 3C) f32 acc
    qkv_ref[0] = qkv.astype(qkv_ref.dtype)


# --------------------------------------------------------------------------
# Stage 2: attention (Q tile vs full K/V) + out-proj + LN2 + MLP + residuals.
# --------------------------------------------------------------------------
def attn_mlp_kernel(x_ref, q_ref, k_ref, v_ref,
                    wo_ref, bo_ref, ln2_g_ref, ln2_b_ref,
                    w1_ref, b1_ref, w2_ref, b2_ref,
                    o_ref, khm_ref, vt_ref, *, approx_gelu):
    num_heads, seq_len, head_dim = khm_ref.shape               # (H, N, hd)
    tile = x_ref.shape[1]                                      # T
    emb = x_ref.shape[2]                                       # C

    # ---- head-major K / V cache: relayouted once per batch element --------
    @pl.when(pl.program_id(1) == 0)
    def _():
        kt = jnp.transpose(k_ref[0].astype(jnp.float32))       # (C, N)
        vt = jnp.transpose(v_ref[0].astype(jnp.float32))       # (C, N)
        kt = kt.reshape(num_heads, head_dim, seq_len)          # (H, hd, N)
        vt = vt.reshape(num_heads, head_dim, seq_len)          # (H, hd, N)
        khm_ref[...] = jnp.transpose(kt, (0, 2, 1)).astype(jnp.bfloat16)
        vt_ref[...] = vt.astype(jnp.bfloat16)

    x = x_ref[0].astype(jnp.float32)                           # (T, C) residual

    # ---- attention (Q already carries the 1/sqrt(hd) scale) ---------------
    q_t = jnp.transpose(q_ref[0].astype(jnp.float32))          # (C, T)
    q_t = q_t.reshape(num_heads, head_dim, tile).astype(jnp.bfloat16)  # (H, hd, T)

    # transposed scores: s[h, n, t] = (Q_h K_h^T)[t, n]
    s = jax.lax.dot_general(khm_ref[...], q_t,
                            (((2,), (1,)), ((0,), (0,))),
                            preferred_element_type=jnp.float32)        # (H, N, T)
    m = jnp.max(s, axis=1, keepdims=True)                      # (H, 1, T)
    p = jnp.exp(s - m)
    l = jnp.sum(p, axis=1, keepdims=True)                      # (H, 1, T)
    # TODO(synk): attention dropout skipped (eval-mode identity).

    # attn^T[h, d, t] = sum_n V[n, h*hd+d] * p[h, n, t]  (normalization deferred)
    attn_t = jax.lax.dot_general(vt_ref[...], p.astype(jnp.bfloat16),
                                 (((2,), (1,)), ((0,), (0,))),
                                 preferred_element_type=jnp.float32)   # (H, hd, T)
    attn_t = attn_t * pl.reciprocal(l, approx=True)

    # fused output projection: single (T, C) @ (C, C) matmul (K = C depth)
    attn_tc = jnp.transpose(attn_t.reshape(emb, tile))         # (T, C) f32
    proj = jnp.dot(attn_tc.astype(jnp.bfloat16), wo_ref[...],
                   preferred_element_type=jnp.float32) + bo_ref[0]

    x1 = x + proj                                              # residual 1

    # ---- LayerNorm2 + MLP ---------------------------------------------------
    x1n = _ln(x1, ln2_g_ref[0], ln2_b_ref[0])
    h = jnp.dot(x1n.astype(jnp.bfloat16), w1_ref[...],
                preferred_element_type=jnp.float32) + b1_ref[0]
    h = jax.nn.gelu(h, approximate=approx_gelu)                # exact erf by default
    h = jnp.dot(h.astype(jnp.bfloat16), w2_ref[...],
                preferred_element_type=jnp.float32) + b2_ref[0]
    # TODO(synk): MLP dropout skipped (eval-mode identity).

    o_ref[0] = (x1 + h).astype(o_ref.dtype)                    # residual 2


# --------------------------------------------------------------------------
# VMEM budgeting / tiling helpers
# --------------------------------------------------------------------------
def _vmem_limit_bytes():
    # ~80% of physical VMEM: ~51 MiB on v7x (64 MiB/TC), ~102 MiB on v5e/v6e
    # (128 MiB) -- leaves headroom for Mosaic internal scratch + pipelining.
    try:
        cap = pltpu.get_tpu_info().vmem_capacity_bytes
    except Exception:
        cap = 64 * 1024 * 1024
    return int(cap * 0.8)


def _stage2_vmem_bytes(T, N, C, M, H, out_bytes, weight_bufs):
    """Rough upper bound on stage-2 VMEM residency for row tile T."""
    bf, f4 = 2, 4
    weights = weight_bufs * ((C * C + C * M + M * C) * bf + (5 * C + M) * f4)
    kv_views = 2 * 2 * N * C * bf            # K, V qkv views (double-buffered)
    kv_cache = 2 * N * C * bf                # head-major K / V scratch
    tiles = 2 * T * C * (2 + 2 + out_bytes)  # x, Q views + out tile (dbl-buffered)
    attn_tmp = H * N * T * (2 * f4 + bf) + 3 * C * T * f4
    mlp_tmp = T * M * (f4 + bf) + 2 * T * C * f4
    rows = 4 * T * C * f4                    # x, x1, x1n, proj in f32
    return int(1.2 * (weights + kv_views + kv_cache + tiles + rows
                      + max(attn_tmp, mlp_tmp)))


def _pick_row_tile(N, C, M, H, out_bytes, vmem_budget, weight_bufs, target=512):
    """Largest row tile (multiple-of-8 divisor of N, capped at target) whose
    stage-2 VMEM estimate fits the budget."""
    cands = sorted({d for d in range(8, N + 1, 8) if N % d == 0} | {N})
    fit = [t for t in cands
           if _stage2_vmem_bytes(t, N, C, M, H, out_bytes, weight_bufs) <= vmem_budget]
    preferred = [t for t in fit if t <= target]
    if preferred:
        return preferred[-1]
    if fit:
        return fit[0]
    # Nothing fits the estimate -- smallest legal tile; rely on limit headroom.
    # TODO(synk): for very large C / N (ViT-H class on v7x) additionally stream
    # the MLP weights over M-chunks and tile K/V with an online softmax.
    return cands[0]


# --------------------------------------------------------------------------
# Wrapper
# --------------------------------------------------------------------------
def _forward(x, params, *, num_heads, row_tile, vmem_limit, weight_bufs,
             approx_gelu):
    B, N, C = x.shape
    hd = C // num_heads
    M = params["w1"].shape[1]

    if row_tile is not None:
        T = row_tile
    else:
        T = _pick_row_tile(N, C, M, num_heads, x.dtype.itemsize,
                           vmem_limit, weight_bufs)
    if N % T != 0:
        T = N
    nt = N // T

    def const_spec(shape):
        nd = len(shape)
        if weight_bufs == 1:
            return pl.BlockSpec(shape, lambda *_: (0,) * nd,
                                pipeline_mode=pl.Buffered(1))
        return pl.BlockSpec(shape, lambda *_: (0,) * nd)

    # Fold the 1/sqrt(head_dim) attention scale into the Q columns of Wqkv
    # (exact by linearity; one-off weight scaling instead of score scaling).
    scale = 1.0 / math.sqrt(hd)
    col_scale = jnp.where(jnp.arange(3 * C) < C, scale, 1.0).astype(jnp.float32)
    wqkv = (params["wqkv"].astype(jnp.float32) * col_scale[None, :]
            ).astype(jnp.bfloat16)

    # ---- stage 1: LN1 + QKV projection --------------------------------------
    qkv = pl.pallas_call(
        ln1_qkv_kernel,
        out_shape=jax.ShapeDtypeStruct((B, N, 3 * C), jnp.bfloat16),
        grid_spec=pltpu.PrefetchScalarGridSpec(
            num_scalar_prefetch=0,
            grid=(B, nt),
            in_specs=[
                pl.BlockSpec((1, T, C), lambda b, i: (b, i, 0)),      # x tile
                const_spec((1, C)), const_spec((1, C)),               # ln1 g/b
                const_spec((C, 3 * C)),                               # Wqkv (scaled Q cols)
            ],
            out_specs=pl.BlockSpec((1, T, 3 * C), lambda b, i: (b, i, 0)),
        ),
        compiler_params=pltpu.CompilerParams(
            dimension_semantics=("parallel", "parallel"),
            vmem_limit_bytes=vmem_limit),
    )(x, params["ln1_g"], params["ln1_b"], wqkv)

    # ---- stage 2: attention + out-proj + LN2 + MLP ---------------------------
    # Q / K / V are lane-column views of qkv selected by BlockSpec only.
    out = pl.pallas_call(
        functools.partial(attn_mlp_kernel, approx_gelu=approx_gelu),
        out_shape=jax.ShapeDtypeStruct((B, N, C), x.dtype),
        grid_spec=pltpu.PrefetchScalarGridSpec(
            num_scalar_prefetch=0,
            grid=(B, nt),
            in_specs=[
                pl.BlockSpec((1, T, C), lambda b, i: (b, i, 0)),      # x row tile
                pl.BlockSpec((1, T, C), lambda b, i: (b, i, 0)),      # Q view of qkv
                pl.BlockSpec((1, N, C), lambda b, i: (b, 0, 1)),      # K view (full seq)
                pl.BlockSpec((1, N, C), lambda b, i: (b, 0, 2)),      # V view (full seq)
                const_spec((C, C)), const_spec((1, C)),               # Wo, bo
                const_spec((1, C)), const_spec((1, C)),               # ln2 g/b
                const_spec((C, M)), const_spec((1, M)),               # W1, b1
                const_spec((M, C)), const_spec((1, C)),               # W2, b2
            ],
            out_specs=pl.BlockSpec((1, T, C), lambda b, i: (b, i, 0)),
            scratch_shapes=[
                pltpu.VMEM((num_heads, N, hd), jnp.bfloat16),         # K head-major
                pltpu.VMEM((num_heads, hd, N), jnp.bfloat16),         # V^T head-major
            ],
        ),
        compiler_params=pltpu.CompilerParams(
            # Batch axis shards across megacore TCs; the row-tile axis stays
            # sequential per core so the per-batch K/V scratch cache is valid
            # and K/V aren't duplicated across cores.
            dimension_semantics=("parallel", "arbitrary"),
            vmem_limit_bytes=vmem_limit),
    )(x, qkv, qkv, qkv,
      params["wo"], params["bo"], params["ln2_g"], params["ln2_b"],
      params["w1"], params["b1"], params["w2"], params["b2"])
    return out


def transformer_encoder_block(x, params, *, num_heads, row_tile=None,
                              approx_gelu=False):
    """Forward pass of the ViT TransformerEncoderBlock (eval mode)."""
    B, N, C = x.shape
    assert C % num_heads == 0, "embed_dim must be divisible by num_heads"
    hd = C // num_heads
    # Lane-column Q/K/V views of the fused qkv array need a 128-aligned
    # embedding dim; head-major reshapes need a sublane-aligned head dim.
    assert C % 128 == 0, "embed_dim must be a multiple of 128"
    assert hd % 8 == 0, "head_dim must be a multiple of 8"

    vmem_limit = _vmem_limit_bytes()
    try:
        return _forward(x, params, num_heads=num_heads, row_tile=row_tile,
                        vmem_limit=vmem_limit, weight_bufs=1,
                        approx_gelu=approx_gelu)
    except Exception as e:  # noqa: BLE001
        # Explicit (loud) fallback: single-buffered weight blocks unsupported
        # on this jax build -> default double buffering, row-tile budget
        # recomputed for the 2x weight VMEM footprint.
        warnings.warn(
            "pl.Buffered(1) weight blocks failed "
            f"({type(e).__name__}: {e}); retrying with default buffering.")
        return _forward(x, params, num_heads=num_heads, row_tile=row_tile,
                        vmem_limit=vmem_limit, weight_bufs=2,
                        approx_gelu=approx_gelu)


# --------------------------------------------------------------------------
# Parameters + pure-JAX reference
# --------------------------------------------------------------------------
def init_params(key, embed_dim: int, num_heads: int, mlp_exp: float = 4.0):
    C = embed_dim
    M = int(C * mlp_exp)
    ks = jax.random.split(key, 7)
    s = 0.02
    bf = jnp.bfloat16
    return {
        "ln1_g": jnp.ones((1, C), jnp.float32),
        "ln1_b": jnp.zeros((1, C), jnp.float32),
        "wqkv": (s * jax.random.normal(ks[0], (C, 3 * C), jnp.float32)).astype(bf),
        "wo":   (s * jax.random.normal(ks[1], (C, C), jnp.float32)).astype(bf),
        "bo":   s * jax.random.normal(ks[2], (1, C), jnp.float32),
        "ln2_g": jnp.ones((1, C), jnp.float32),
        "ln2_b": jnp.zeros((1, C), jnp.float32),
        "w1":   (s * jax.random.normal(ks[3], (C, M), jnp.float32)).astype(bf),
        "b1":   s * jax.random.normal(ks[4], (1, M), jnp.float32),
        "w2":   (s * jax.random.normal(ks[5], (M, C), jnp.float32)).astype(bf),
        "b2":   s * jax.random.normal(ks[6], (1, C), jnp.float32),
    }


def reference_forward(x, p, *, num_heads: int):
    """Pure-JAX f32 reference mirroring the PyTorch forward (eval mode)."""
    f32 = jnp.float32
    x = x.astype(f32)
    B, N, C = x.shape
    hd = C // num_heads

    def ln(y, g, b):
        mu = jnp.mean(y, -1, keepdims=True)
        var = jnp.mean((y - mu) ** 2, -1, keepdims=True)
        return (y - mu) / jnp.sqrt(var + _EPS) * g[0] + b[0]

    xn = ln(x, p["ln1_g"], p["ln1_b"])
    qkv = (xn @ p["wqkv"].astype(f32)).reshape(B, N, 3, num_heads, hd)
    qkv = qkv.transpose(2, 0, 3, 1, 4)
    q, k, v = qkv[0], qkv[1], qkv[2]                            # (B, H, N, hd)
    att = jnp.einsum("bhnd,bhmd->bhnm", q, k) / math.sqrt(hd)
    att = jax.nn.softmax(att, axis=-1)
    out = jnp.einsum("bhnm,bhmd->bhnd", att, v).transpose(0, 2, 1, 3).reshape(B, N, C)
    out = out @ p["wo"].astype(f32) + p["bo"][0]
    x1 = x + out
    x1n = ln(x1, p["ln2_g"], p["ln2_b"])
    h = jax.nn.gelu(x1n @ p["w1"].astype(f32) + p["b1"][0], approximate=False)
    h = h @ p["w2"].astype(f32) + p["b2"][0]
    return x1 + h


if __name__ == "__main__":
    B, N, C, H = 2, 8, 128, 4
    key = jax.random.PRNGKey(0)
    kx, kx2, kp = jax.random.split(key, 3)
    x = jax.random.normal(kx, (B, N, C), jnp.float32).astype(jnp.bfloat16)
    params = init_params(kp, embed_dim=C, num_heads=H)

    out = jax.block_until_ready(transformer_encoder_block(x, params, num_heads=H))
    ref = reference_forward(x, params, num_heads=H)
    assert out.shape == (B, N, C)
    err = float(jnp.max(jnp.abs(out.astype(jnp.float32) - ref)))
    assert err < 5e-2, f"max abs err = {err}"

    # Multi-row-tile path: exercises the per-batch K/V relayout cache (i == 0).
    N2 = 16
    x2 = jax.random.normal(kx2, (B, N2, C), jnp.float32).astype(jnp.bfloat16)
    out2 = jax.block_until_ready(
        transformer_encoder_block(x2, params, num_heads=H, row_tile=8))
    ref2 = reference_forward(x2, params, num_heads=H)
    err2 = float(jnp.max(jnp.abs(out2.astype(jnp.float32) - ref2)))
    assert err2 < 5e-2, f"max abs err (tiled) = {err2}"

    print("KERNEL_OK")
</pallas_src>

<mosaic_0001>
module attributes {stable_mosaic.version = 11 : i64} {
  func.func @ln1_qkv_kernel(%arg0: i32, %arg1: i32, %arg2: memref<1x8x128xbf16, #tpu.memory_space<vmem>>, %arg3: memref<1x128xf32, #tpu.memory_space<vmem>>, %arg4: memref<1x128xf32, #tpu.memory_space<vmem>>, %arg5: memref<128x384xbf16, #tpu.memory_space<vmem>>, %arg6: memref<1x8x384xbf16, #tpu.memory_space<vmem>>) attributes {dimension_semantics = [#tpu.dimension_semantics<parallel>, #tpu.dimension_semantics<parallel>], iteration_bounds = array<i64: 2, 1>, scalar_prefetch = 0 : i64, scratch_operands = 0 : i64, tpu.core_type = #tpu.core_type<tc>, window_params = [{transform_indices = @transform_0, window_bounds = array<i64: 1, 8, 128>}, {pipeline_mode = #tpu.pipeline_mode<synchronous>, transform_indices = @transform_1, window_bounds = array<i64: 1, 128>}, {pipeline_mode = #tpu.pipeline_mode<synchronous>, transform_indices = @transform_2, window_bounds = array<i64: 1, 128>}, {pipeline_mode = #tpu.pipeline_mode<synchronous>, transform_indices = @transform_3, window_bounds = array<i64: 128, 384>}, {transform_indices = @transform_4, window_bounds = array<i64: 1, 8, 384>}]} {
    %c0 = arith.constant 0 : index
    %c0_0 = arith.constant 0 : index
    %c0_1 = arith.constant 0 : index
    %0 = vector.load %arg2[%c0, %c0_0, %c0_1] : memref<1x8x128xbf16, #tpu.memory_space<vmem>>, vector<1x8x128xbf16>
    %1 = vector.shape_cast %0 : vector<1x8x128xbf16> to vector<8x128xbf16>
    %2 = arith.extf %1 : vector<8x128xbf16> to vector<8x128xf32>
    %c0_2 = arith.constant 0 : index
    %c0_3 = arith.constant 0 : index
    %3 = vector.load %arg3[%c0_2, %c0_3] : memref<1x128xf32, #tpu.memory_space<vmem>>, vector<1x128xf32>
    %4 = vector.shape_cast %3 : vector<1x128xf32> to vector<128xf32>
    %c0_4 = arith.constant 0 : index
    %c0_5 = arith.constant 0 : index
    %5 = vector.load %arg4[%c0_4, %c0_5] : memref<1x128xf32, #tpu.memory_space<vmem>>, vector<1x128xf32>
    %6 = vector.shape_cast %5 : vector<1x128xf32> to vector<128xf32>
    %cst = arith.constant dense<0.000000e+00> : vector<8xf32>
    %7 = vector.multi_reduction <add>, %2, %cst [1] : vector<8x128xf32> to vector<8xf32>
    %8 = vector.shape_cast %7 : vector<8xf32> to vector<8x1xf32>
    %cst_6 = arith.constant 1.280000e+02 : f32
    %9 = vector.broadcast %cst_6 : f32 to vector<8x1xf32>
    %10 = arith.divf %8, %9 : vector<8x1xf32>
    %11 = vector.broadcast %10 : vector<8x1xf32> to vector<8x128xf32>
    %12 = arith.subf %2, %11 : vector<8x128xf32>
    %13 = arith.mulf %12, %12 : vector<8x128xf32>
    %cst_7 = arith.constant dense<0.000000e+00> : vector<8xf32>
    %14 = vector.multi_reduction <add>, %13, %cst_7 [1] : vector<8x128xf32> to vector<8xf32>
    %15 = vector.shape_cast %14 : vector<8xf32> to vector<8x1xf32>
    %cst_8 = arith.constant 1.280000e+02 : f32
    %16 = vector.broadcast %cst_8 : f32 to vector<8x1xf32>
    %17 = arith.divf %15, %16 : vector<8x1xf32>
    %18 = vector.broadcast %10 : vector<8x1xf32> to vector<8x128xf32>
    %19 = arith.subf %2, %18 : vector<8x128xf32>
    %cst_9 = arith.constant 9.99999974E-6 : f32
    %20 = vector.broadcast %cst_9 : f32 to vector<8x1xf32>
    %21 = arith.addf %17, %20 : vector<8x1xf32>
    %22 = math.rsqrt %21 : vector<8x1xf32>
    %23 = vector.broadcast %22 : vector<8x1xf32> to vector<8x128xf32>
    %24 = arith.mulf %19, %23 : vector<8x128xf32>
    %25 = vector.shape_cast %4 : vector<128xf32> to vector<1x128xf32>
    %26 = vector.broadcast %25 : vector<1x128xf32> to vector<8x128xf32>
    %27 = arith.mulf %24, %26 : vector<8x128xf32>
    %28 = vector.shape_cast %6 : vector<128xf32> to vector<1x128xf32>
    %29 = vector.broadcast %28 : vector<1x128xf32> to vector<8x128xf32>
    %30 = arith.addf %27, %29 : vector<8x128xf32>
    %31 = arith.truncf %30 : vector<8x128xf32> to vector<8x128xbf16>
    %c0_10 = arith.constant 0 : index
    %c0_11 = arith.constant 0 : index
    %32 = vector.load %arg5[%c0_10, %c0_11] : memref<128x384xbf16, #tpu.memory_space<vmem>>, vector<128x384xbf16>
    %cst_12 = arith.constant dense<0.000000e+00> : vector<8x384xf32>
    %33 = tpu.matmul %31, %32, %cst_12 {dimension_numbers = #tpu.dot_dimension_numbers<[1], [0], [0], [1], [0, 0, 1, 1], [], []>} : vector<8x128xbf16>, vector<128x384xbf16>, vector<8x384xf32> -> vector<8x384xf32>
    %34 = arith.truncf %33 : vector<8x384xf32> to vector<8x384xbf16>
    %c0_13 = arith.constant 0 : index
    %c0_14 = arith.constant 0 : index
    %c0_15 = arith.constant 0 : index
    %35 = vector.load %arg6[%c0_13, %c0_14, %c0_15] : memref<1x8x384xbf16, #tpu.memory_space<vmem>>, vector<1x8x384xbf16>
    %36 = vector.shape_cast %35 : vector<1x8x384xbf16> to vector<8x384xbf16>
    %37 = vector.shape_cast %34 : vector<8x384xbf16> to vector<1x8x384xbf16>
    tpu.vector_store %arg6[%c0_13, %c0_14, %c0_15], %37 {strides = array<i32>} : memref<1x8x384xbf16, #tpu.memory_space<vmem>>, vector<1x8x384xbf16>,
    return
  }
  func.func @transform_0(%arg0: i32, %arg1: i32) -> (i32, i32, i32) {
    %c0_i32 = arith.constant 0 : i32
    %c0_i32_0 = arith.constant 0 : i32
    return %arg0, %arg1, %c0_i32 : i32, i32, i32
  }
  func.func @transform_1(%arg0: i32, %arg1: i32) -> (i32, i32) {
    %c0_i32 = arith.constant 0 : i32
    %c0_i32_0 = arith.constant 0 : i32
    %c0_i32_1 = arith.constant 0 : i32
    return %c0_i32, %c0_i32_0 : i32, i32
  }
  func.func @transform_2(%arg0: i32, %arg1: i32) -> (i32, i32) {
    %c0_i32 = arith.constant 0 : i32
    %c0_i32_0 = arith.constant 0 : i32
    %c0_i32_1 = arith.constant 0 : i32
    return %c0_i32, %c0_i32_0 : i32, i32
  }
  func.func @transform_3(%arg0: i32, %arg1: i32) -> (i32, i32) {
    %c0_i32 = arith.constant 0 : i32
    %c0_i32_0 = arith.constant 0 : i32
    %c0_i32_1 = arith.constant 0 : i32
    return %c0_i32, %c0_i32_0 : i32, i32
  }
  func.func @transform_4(%arg0: i32, %arg1: i32) -> (i32, i32, i32) {
    %c0_i32 = arith.constant 0 : i32
    %c0_i32_0 = arith.constant 0 : i32
    return %arg0, %arg1, %c0_i32 : i32, i32, i32
  }
}

module attributes {stable_mosaic.version = 11 : i64} {
  func.func @ln1_qkv_kernel(%arg0: i32, %arg1: i32, %arg2: memref<1x8x128xbf16, #tpu.memory_space<vmem>>, %arg3: memref<1x128xf32, #tpu.memory_space<vmem>>, %arg4: memref<1x128xf32, #tpu.memory_space<vmem>>, %arg5: memref<128x384xbf16, #tpu.memory_space<vmem>>, %arg6: memref<1x8x384xbf16, #tpu.memory_space<vmem>>) attributes {dimension_semantics = [#tpu.dimension_semantics<parallel>, #tpu.dimension_semantics<parallel>], iteration_bounds = array<i64: 2, 1>, scalar_prefetch = 0 : i64, scratch_operands = 0 : i64, tpu.core_type = #tpu.core_type<tc>, window_params = [{transform_indices = @transform_0, window_bounds = array<i64: 1, 8, 128>}, {pipeline_mode = #tpu.pipeline_mode<synchronous>, transform_indices = @transform_1, window_bounds = array<i64: 1, 128>}, {pipeline_mode = #tpu.pipeline_mode<synchronous>, transform_indices = @transform_2, window_bounds = array<i64: 1, 128>}, {pipeline_mode = #tpu.pipeline_mode<synchronous>, transform_indices = @transform_3, window_bounds = array<i64: 128, 384>}, {transform_indices = @transform_4, window_bounds = array<i64: 1, 8, 384>}]} {
    %c0 = arith.constant 0 : index
    %c0_0 = arith.constant 0 : index
    %c0_1 = arith.constant 0 : index
    %0 = vector.load %arg2[%c0, %c0_0, %c0_1] : memref<1x8x128xbf16, #tpu.memory_space<vmem>>, vector<1x8x128xbf16>
    %1 = vector.shape_cast %0 : vector<1x8x128xbf16> to vector<8x128xbf16>
    %2 = arith.extf %1 : vector<8x128xbf16> to vector<8x128xf32>
    %c0_2 = arith.constant 0 : index
    %c0_3 = arith.constant 0 : index
    %3 = vector.load %arg3[%c0_2, %c0_3] : memref<1x128xf32, #tpu.memory_space<vmem>>, vector<1x128xf32>
    %4 = vector.shape_cast %3 : vector<1x128xf32> to vector<128xf32>
    %c0_4 = arith.constant 0 : index
    %c0_5 = arith.constant 0 : index
    %5 = vector.load %arg4[%c0_4, %c0_5] : memref<1x128xf32, #tpu.memory_space<vmem>>, vector<1x128xf32>
    %6 = vector.shape_cast %5 : vector<1x128xf32> to vector<128xf32>
    %cst = arith.constant dense<0.000000e+00> : vector<8xf32>
    %7 = vector.multi_reduction <add>, %2, %cst [1] : vector<8x128xf32> to vector<8xf32>
    %8 = vector.shape_cast %7 : vector<8xf32> to vector<8x1xf32>
    %cst_6 = arith.constant 1.280000e+02 : f32
    %9 = vector.broadcast %cst_6 : f32 to vector<8x1xf32>
    %10 = arith.divf %8, %9 : vector<8x1xf32>
    %11 = vector.broadcast %10 : vector<8x1xf32> to vector<8x128xf32>
    %12 = arith.subf %2, %11 : vector<8x128xf32>
    %13 = arith.mulf %12, %12 : vector<8x128xf32>
    %cst_7 = arith.constant dense<0.000000e+00> : vector<8xf32>
    %14 = vector.multi_reduction <add>, %13, %cst_7 [1] : vector<8x128xf32> to vector<8xf32>
    %15 = vector.shape_cast %14 : vector<8xf32> to vector<8x1xf32>
    %cst_8 = arith.constant 1.280000e+02 : f32
    %16 = vector.broadcast %cst_8 : f32 to vector<8x1xf32>
    %17 = arith.divf %15, %16 : vector<8x1xf32>
    %18 = vector.broadcast %10 : vector<8x1xf32> to vector<8x128xf32>
    %19 = arith.subf %2, %18 : vector<8x128xf32>
    %cst_9 = arith.constant 9.99999974E-6 : f32
    %20 = vector.broadcast %cst_9 : f32 to vector<8x1xf32>
    %21 = arith.addf %17, %20 : vector<8x1xf32>
    %22 = math.rsqrt %21 : vector<8x1xf32>
    %23 = vector.broadcast %22 : vector<8x1xf32> to vector<8x128xf32>
    %24 = arith.mulf %19, %23 : vector<8x128xf32>
    %25 = vector.shape_cast %4 : vector<128xf32> to vector<1x128xf32>
    %26 = vector.broadcast %25 : vector<1x128xf32> to vector<8x128xf32>
    %27 = arith.mulf %24, %26 : vector<8x128xf32>
    %28 = vector.shape_cast %6 : vector<128xf32> to vector<1x128xf32>
    %29 = vector.broadcast %28 : vector<1x128xf32> to vector<8x128xf32>
    %30 = arith.addf %27, %29 : vector<8x128xf32>
    %31 = arith.truncf %30 : vector<8x128xf32> to vector<8x128xbf16>
    %c0_10 = arith.constant 0 : index
    %c0_11 = arith.constant 0 : index
    %32 = vector.load %arg5[%c0_10, %c0_11] : memref<128x384xbf16, #tpu.memory_space<vmem>>, vector<128x384xbf16>
    %cst_12 = arith.constant dense<0.000000e+00> : vector<8x384xf32>
    %33 = tpu.matmul %31, %32, %cst_12 {dimension_numbers = #tpu.dot_dimension_numbers<[1], [0], [0], [1], [0, 0, 1, 1], [], []>} : vector<8x128xbf16>, vector<128x384xbf16>, vector<8x384xf32> -> vector<8x384xf32>
    %34 = arith.truncf %33 : vector<8x384xf32> to vector<8x384xbf16>
    %c0_13 = arith.constant 0 : index
    %c0_14 = arith.constant 0 : index
    %c0_15 = arith.constant 0 : index
    %35 = vector.load %arg6[%c0_13, %c0_14, %c0_15] : memref<1x8x384xbf16, #tpu.memory_space<vmem>>, vector<1x8x384xbf16>
    %36 = vector.shape_cast %35 : vector<1x8x384xbf16> to vector<8x384xbf16>
    %37 = vector.shape_cast %34 : vector<8x384xbf16> to vector<1x8x384xbf16>
    tpu.vector_store %arg6[%c0_13, %c0_14, %c0_15], %37 {strides = array<i32>} : memref<1x8x384xbf16, #tpu.memory_space<vmem>>, vector<1x8x384xbf16>,
    return
  }
  func.func @transform_0(%arg0: i32, %arg1: i32) -> (i32, i32, i32) {
    %c0_i32 = arith.constant 0 : i32
    %c0_i32_0 = arith.constant 0 : i32
    return %arg0, %arg1, %c0_i32 : i32, i32, i32
  }
  func.func @transform_1(%arg0: i32, %arg1: i32) -> (i32, i32) {
    %c0_i32 = arith.constant 0 : i32
    %c0_i32_0 = arith.constant 0 : i32
    %c0_i32_1 = arith.constant 0 : i32
    return %c0_i32, %c0_i32_0 : i32, i32
  }
  func.func @transform_2(%arg0: i32, %arg1: i32) -> (i32, i32) {
    %c0_i32 = arith.constant 0 : i32
    %c0_i32_0 = arith.constant 0 : i32
    %c0_i32_1 = arith.constant 0 : i32
    return %c0_i32, %c0_i32_0 : i32, i32
  }
  func.func @transform_3(%arg0: i32, %arg1: i32) -> (i32, i32) {
    %c0_i32 = arith.constant 0 : i32
    %c0_i32_0 = arith.constant 0 : i32
    %c0_i32_1 = arith.constant 0 : i32
    return %c0_i32, %c0_i32_0 : i32, i32
  }
  func.func @transform_4(%arg0: i32, %arg1: i32) -> (i32, i32, i32) {
    %c0_i32 = arith.constant 0 : i32
    %c0_i32_0 = arith.constant 0 : i32
    return %arg0, %arg1, %c0_i32 : i32, i32, i32
  }
}

</mosaic_0001>

<bundles_post_ra>
// kernel: tpu_custom_call.1
= control target key start
LH: loop header
LB: loop body
LE: loop exit
PB: predicated region body
PF: predicated region fallthrough
CT: control target
= control target key end

     0   :  { %9 = vsyncpa [#allocation3], 0  ;;  %s1222_s0 = inlined_call_operand.hbm [shape: bf16[2,8,128], index: 0, kind: input, shape index: {}]   ;;  %s1223_s1 = inlined_call_operand.hbm [shape: f32[1,128], index: 1, kind: input, shape index: {}]   ;;  %s1224_s2 = inlined_call_operand.vmem [shape: f32[1,128], index: 2, kind: input, shape index: {}]   ;;  %s1225_s3 = inlined_call_operand.hbm [shape: bf16[128,384], index: 3, kind: input, shape index: {}]   ;;  %s1226_s4 = inlined_call_operand.hbm [shape: bf16[2,8,384], index: 4, kind: output, shape index: {}]  }
   0x1   :  { %11 = vsyncpa [#allocation3 + $0x1], 0 }
   0x2   :  { %12 = vsyncpa [#allocation6], 0 }
   0x3   :  { %13 = vsyncpa [#allocation4], 0 }
   0x4   :  { %15 = vsyncpa [#allocation4 + $0x1], 0  ;;  %s1063_s15 = smov 0   ;;  %s1065_s16 = smov 0  }
   0x5   :  { %s1067_s17 = smov 0   ;;  %s1069_s18 = smov 0  }
   0x6   :  { %s1071_s19 = smov 0   ;;  %s1073_s20 = smov 0  }
   0x7 LB: > { %s626_s21 = sadd.s32 4294967295, %s1031_s20   ;;  %s627_s22 = sadd.s32 4294967294, %s1031_s20   ;;  %s1031_s20 = sphi %s1073_s20, %s21_s20   ;;  %s1027_s19 = sphi %s1071_s19, %s1236_s19   ;;  %s1023_s18 = sphi %s1069_s18, %s1235_s18   ;;  %s1019_s17 = sphi %s1067_s17, %s1234_s17   ;;  %s1015_s16 = sphi %s1065_s16, %s1233_s16   ;;  %s1011_s15 = sphi %s1063_s15, %s1232_s15  }
   0x8   : > { %p55_p0 = scmp.ne.s32.totalorder %s1015_s16, %s1011_s15  ;;  %p1099_p1 = scmp.eq.s32.totalorder %s626_s21, 0 }
   0x9   : > { %p150_p2 = scmp.eq.s32.totalorder %s627_s22, 1  ;;  %p628_p4 = scmp.ge.s32.totalorder %s1031_s20, 1 }
   0xa   : > { %p1105_p3 = por %p1099_p1, %p55_p0  ;;  %p157_p6 = scmp.lt.s32.totalorder %s1031_s20, 3 }
   0xb   : > { %p1110_p5 = por %p150_p2, %p55_p0  ;;  %s169_s28 = sshll.u32 %s1223_s1, 4  ;;  %s170_s28 = int_to_ptr.hbm [resolvable:$true] %s169_s28 }
   0xc   : > { %p1118_p7 = pnand %p628_p4, %p157_p6  ;;  %p631_p8 = scmp.ge.s32.totalorder %s1031_s20, 2 }
   0xd   : > { %s1033_s30 = smov [#allocation5]   ;;  %s183_s8 = sshll.u32 %s1225_s3, 4  ;;  %s184_s8 = int_to_ptr.hbm [resolvable:$true] %s183_s8 }
   0xe   : > { %p775_p9 = pneg %p1118_p7  ;;  %s171_s5 = sshll.u32 %s1033_s30, 4  ;;  %s172_s5 = int_to_ptr.vmem [resolvable:$true] %s171_s5 }
   0xf   : > { %s1034_s9 = smov [#allocation7]   ;;  %s1035_s11 = smov 192  }
  0x10   : > { %p776_p10 = pnand %p775_p9, %p1099_p1  ;;  %s185_s10 = sshll.u32 %s1034_s9, 4  ;;  %s186_s10 = int_to_ptr.vmem [resolvable:$true] %s185_s10 }
  0x11   : > { %s1036_s12 = smov 12   ;;  %p144_p11 = scmp.eq.s32.totalorder %s626_s21, 1 }
  0x12   : > { %778 = dma.hbm_to_vmem [thread:$0]  (!%p776_p10), %s170_s28, 16, %s172_s5, [#allocation6]  }
  0x13   : > { %781 = dma.hbm_to_vmem [thread:$0]  (!%p776_p10), %s184_s8, 3072, %s186_s10, [#allocation6], %s1035_s11, %s1035_s11, %s1036_s12  }
  0x14   : > { %s33_s13 = sadd.s32 1, %s1027_s19  ;;  %s42_s14 = sadd.s32 1, %s1019_s17 }
  0x15   : > { %p35_p12 = scmp.ge.s32.totalorder %s33_s13, 2  ;;  %p49_p13 = scmp.ne.s32.totalorder %s1019_s17, %s1015_s16 }
  0x16   : > { %p50_p0 = scmp.eq.s32.totalorder %s1031_s20, 0  ;;  %p792_p4 = scmp.lt.s32.totalorder %s1031_s20, 2 }
  0x17   : > { %s1238_s13 = smov (%p35_p12, %s33_s13), 0  ;;  %p1139_p2 = por %p144_p11, %p49_p13 }
  0x18   : > { %s37_s26 = ssub.s32 %s1027_s19, %s1238_s13  ;;  %s199_s27 = sand.u32 1, %s1019_s17  }
  0x19   : > { %p40_p6 = scmp.eq.s32.totalorder %s37_s26, 0  ;;  %p51_p9 = por %p50_p0, %p49_p13 }
  0x1a   : > { %s632_s28 = sshll.u32 %s199_s27, 2  ;;  %s633_s21 = sshll.u32 %s1027_s19, 2 }
  0x1b   : > { %s1149_s30 = scalar_select %p40_p6, %s1019_s17, %s42_s14  }
  0x1c   : > { %s208_s7 = scalar_lea.hbm %s1222_s0, %s633_s21  ;;  %s203_s9 = scalar_lea.vmem [#allocation2], %s632_s28 }
  0x1d   : > { %s210_s8 = sshll.u32 %s208_s7, 4  ;;  %s212_s10 = sshll.u32 %s203_s9, 4  ;;  %s211_s8 = int_to_ptr.hbm [resolvable:$true] %s210_s8  ;;  %s213_s10 = int_to_ptr.vmem [resolvable:$true] %s212_s10 }
  0x1e   : > { %p783_p10 = pnand %p792_p4, %p51_p9  ;;  %s200_s11 = scalar_lea.sflag [#allocation3], %s199_s27 }
  0x1f   : > { %221 = sbr.rel (%p1118_p7) target bundleno = 451 (0x1c3), region = 36  ;;  %s1159_s12 = sand.u32 (!%p1118_p7), 1, %s1015_s16  }
  0x20   : > { %785 = dma.hbm_to_vmem [thread:$0]  (!%p783_p10), %s211_s8, 64, %s213_s10, %s200_s11  }
  0x21   : > { %s635_s14 = sshll.u32 (!%p1118_p7), %s1159_s12, 2  ;;  %s224_s26 = scalar_lea.sflag (!%p1118_p7), [#allocation3], %s1159_s12 }
  0x22   : > { %s227_s21 = scalar_lea.vmem (!%p1118_p7), [#allocation2], %s635_s14 }
  0x24   : > { %998 = dma.done.wait (%p1105_p3), %s224_s26, 64  }
  0x25   : > { %1000 = vsyncadd (%p1105_p3), %s224_s26, 4294967232 }
  0x26   : > { %1002 = dma.done.wait (%p1099_p1), [#allocation6], 3088  }
  0x27   : > { %1004 = vsyncadd (%p1099_p1), [#allocation6], 4294964208  ;;  %v263_v0 = vld [vmem:[%s227_s21] sm:$0xf]  ;;  %v1037_v2 = vmov 128.0   ;;  %s761_s29 = smul.u32 12, %s1159_s12 }
  0x28   : > { %v264_v1 = vunpack.c.l.bf16 %v263_v0  ;;  %851 = vrcp.f32 %v1037_v2  ;;  %v724_v3 = vld [vmem:[#allocation7 + $0xa8] sm:$0xf]  ;;  %v759_v4 = vld [vmem:[#allocation7 + $0xb0] sm:$0xf0]  ;;  %v758_v5 = vld [vmem:[#allocation7 + $0xac] sm:$0xf] }
  0x29   : > { %v725_v6 = vor.u32 %v759_v4, %v724_v3  ;;  %v726_v7 = vld [vmem:[#allocation7 + $0xb4] sm:$0xf0]  ;;  %v732_v8 = vld [vmem:[#allocation7 + $0xb0] sm:$0xf]  ;;  %v760_v9 = vld [vmem:[#allocation7 + $0xb8] sm:$0xf0] }
  0x2a   : > { %267 = vadd.xlane.f32.xlu0 %v264_v1  ;;  %v729_v10 = vor.u32 %v758_v5, %v726_v7  ;;  %v733_v11 = vor.u32 %v760_v9, %v732_v8  ;;  %v712_v22 = vld [vmem:[#allocation7 + $0x90] sm:$0xf]  ;;  %v756_v23 = vld [vmem:[#allocation7 + $0x98] sm:$0xf0]  ;;  %v755_v24 = vld [vmem:[#allocation7 + $0x94] sm:$0xf] }
  0x2b   : > { %463 = vmatpush.bf16.msra.mxu0 %v725_v6  ;;  %v713_v25 = vor.u32 %v756_v23, %v712_v22  ;;  %v714_v26 = vld [vmem:[#allocation7 + $0x9c] sm:$0xf0]  ;;  %v720_v27 = vld [vmem:[#allocation7 + $0x98] sm:$0xf]  ;;  %v757_v28 = vld [vmem:[#allocation7 + $0xa0] sm:$0xf0] }
  0x2c   : > { %476 = vmatpush.bf16.msra.mxu1 %v729_v10  ;;  %489 = vmatpush.bf16.msra.mxu2 %v733_v11  ;;  %v717_v29 = vor.u32 %v755_v24, %v714_v26  ;;  %v721_v30 = vor.u32 %v757_v28, %v720_v27  ;;  %v700_v31 = vld [vmem:[#allocation7 + $0x78] sm:$0xf]  ;;  %v753_v32 = vld [vmem:[#allocation7 + $0x80] sm:$0xf0]  ;;  %v752_v33 = vld [vmem:[#allocation7 + $0x7c] sm:$0xf] }
  0x2d   : > { %v701_v34 = vor.u32 %v753_v32, %v700_v31  ;;  %v702_v35 = vld [vmem:[#allocation7 + $0x84] sm:$0xf0]  ;;  %v708_v36 = vld [vmem:[#allocation7 + $0x80] sm:$0xf]  ;;  %v754_v37 = vld [vmem:[#allocation7 + $0x88] sm:$0xf0] }
  0x2e   : > { %v852_v12 = vpop.eup %851  ;;  %v705_v38 = vor.u32 %v752_v33, %v702_v35  ;;  %v709_v39 = vor.u32 %v754_v37, %v708_v36  ;;  %v688_v40 = vld [vmem:[#allocation7 + $0x60] sm:$0xf]  ;;  %v750_v41 = vld [vmem:[#allocation7 + $0x68] sm:$0xf0]  ;;  %v749_v42 = vld [vmem:[#allocation7 + $0x64] sm:$0xf] }
  0x2f   : > { %v270_v13 = vmul.f32 128.0, %v852_v12  ;;  %vm274_vm0 = vweird.f32 %v852_v12  ;;  %464 = vmatpush.bf16.msra.mxu0 %v713_v25  ;;  %v689_v43 = vor.u32 %v750_v41, %v688_v40  ;;  %v690_v44 = vld [vmem:[#allocation7 + $0x6c] sm:$0xf0]  ;;  %v696_v45 = vld [vmem:[#allocation7 + $0x68] sm:$0xf]  ;;  %s762_s27 = smul.u32 12, %s1023_s18 }
  0x30   : > { %477 = vmatpush.bf16.msra.mxu1 %v717_v29  ;;  %490 = vmatpush.bf16.msra.mxu2 %v721_v30  ;;  %v751_v46 = vld [vmem:[#allocation7 + $0x70] sm:$0xf0]  ;;  %v693_v47 = vor.u32 %v749_v42, %v690_v44  ;;  %v676_v49 = vld [vmem:[#allocation7 + $0x48] sm:$0xf]  ;;  %v746_v51 = vld [vmem:[#allocation7 + $0x4c] sm:$0xf] }
  0x31   : > { %v271_v14 = vsub.f32 1.0, %v270_v13  ;;  %v697_v48 = vor.u32 %v751_v46, %v696_v45  ;;  %v747_v50 = vld [vmem:[#allocation7 + $0x50] sm:$0xf0]  ;;  %v678_v53 = vld [vmem:[#allocation7 + $0x54] sm:$0xf0]  ;;  %s520_s6 = scalar_lea.hbm %s1226_s4, %s762_s27  ;;  %s262_s7 = scalar_lea.vmem [#allocation8], %s761_s29 }
  0x32   : > { %v677_v52 = vor.u32 %v747_v50, %v676_v49  ;;  %v684_v54 = vld [vmem:[#allocation7 + $0x50] sm:$0xf]  ;;  %v748_v55 = vld [vmem:[#allocation7 + $0x58] sm:$0xf0]  ;;  %v681_v56 = vor.u32 %v746_v51, %v678_v53  ;;  %v743_v60 = vld [vmem:[#allocation7 + $0x34] sm:$0xf] }
  0x33   : > { %v272_v15 = vmul.f32 %v852_v12, %v271_v14  ;;  %465 = vmatpush.bf16.msra.mxu0 %v701_v34  ;;  %v685_v57 = vor.u32 %v748_v55, %v684_v54  ;;  %v664_v58 = vld [vmem:[#allocation7 + $0x30] sm:$0xf]  ;;  %v744_v59 = vld [vmem:[#allocation7 + $0x38] sm:$0xf0]  ;;  %v666_v62 = vld [vmem:[#allocation7 + $0x3c] sm:$0xf0] }
  0x34   : > { %478 = vmatpush.bf16.msra.mxu1 %v705_v38  ;;  %491 = vmatpush.bf16.msra.mxu2 %v709_v39  ;;  %v665_v61 = vor.u32 %v744_v59, %v664_v58  ;;  %v672_v63 = vld [vmem:[#allocation7 + $0x38] sm:$0xf]  ;;  %v745_v0 = vld [vmem:[#allocation7 + $0x40] sm:$0xf0]  ;;  %v740_v5 = vld [vmem:[#allocation7 + $0x1c] sm:$0xf] }
  0x35   : > { %v273_v16 = vadd.f32 %v852_v12, %v272_v15  ;;  %v673_v2 = vor.u32 %v745_v0, %v672_v63  ;;  %v652_v3 = vld [vmem:[#allocation7 + $0x18] sm:$0xf]  ;;  %v741_v4 = vld [vmem:[#allocation7 + $0x20] sm:$0xf0]  ;;  %v654_v7 = vld [vmem:[#allocation7 + $0x24] sm:$0xf0] }
  0x36   : > { %v653_v6 = vor.u32 %v741_v4, %v652_v3  ;;  %v660_v8 = vld [vmem:[#allocation7 + $0x20] sm:$0xf]  ;;  %v742_v9 = vld [vmem:[#allocation7 + $0x28] sm:$0xf0]  ;;  %v657_v10 = vor.u32 %v740_v5, %v654_v7  ;;  %v737_v14 = vld [vmem:[#allocation7 + $0x4] sm:$0xf] }
  0x37   : > { %v1171_v17 = vsel %vm274_vm0, %v852_v12, %v273_v16  ;;  %466 = vmatpush.bf16.msra.mxu0 %v689_v43  ;;  %v661_v11 = vor.u32 %v742_v9, %v660_v8  ;;  %v640_v12 = vld [vmem:[#allocation7] sm:$0xf]  ;;  %v738_v13 = vld [vmem:[#allocation7 + $0x8] sm:$0xf0]  ;;  %v642_v16 = vld [vmem:[#allocation7 + $0xc] sm:$0xf0] }
  0x38   : > { %479 = vmatpush.bf16.msra.mxu1 %v693_v47  ;;  %492 = vmatpush.bf16.msra.mxu2 %v697_v48  ;;  %v641_v15 = vor.u32 %v738_v13, %v640_v12  ;;  %v849_v32 = vld [vmem:[#allocation5] ss:$0 sm:$0xff]  ;;  %s522_s8 = sshll.u32 %s262_s7, 4  ;;  %s524_s9 = sshll.u32 %s520_s6, 4  ;;  %s523_s8 = int_to_ptr.vmem [resolvable:$true] %s522_s8  ;;  %s525_s9 = int_to_ptr.hbm [resolvable:$true] %s524_s9 }
  0x39   : > { %s507_s18 = scalar_lea.sflag [#allocation4], %s1159_s12  ;;  %s959_s10 = sshra.s32 %s525_s9, 4  ;;  %s960_s10 = int_to_ptr.hbm [resolvable:$true] %s959_s10 }
  0x3a   : > { %s961_s11 = scalar_lea.hbm %s960_s10, 12  ;;  %s965_s21 = scalar_lea.hbm %s1226_s4, 24 }
  0x3b   : > { %467 = vmatpush.bf16.msra.mxu0 %v677_v52  ;;  %p962_p1 = scmp.ne.s32.totalorder %s960_s10, %s961_s11  ;;  %p966_p11 = scmp.lt.s32.totalorder %s960_s10, %s1226_s4 }
  0x3c   : > { %480 = vmatpush.bf16.msra.mxu1 %v681_v56  ;;  %493 = vmatpush.bf16.msra.mxu2 %v685_v57  ;;  %p967_p12 = scmp.lt.s32.totalorder %s965_s21, %s961_s11 }
  0x3d   : > { %p963_p3 = pnand %p962_p1, %p1139_p2 }
  0x3e   : > { %p968_p13 = por %p967_p12, %p966_p11 }
  0x3f   : > { %468 = vmatpush.bf16.msra.mxu0 %v665_v61  ;;  %p964_p7 = pneg %p963_p3 }
  0x40   : > { %494 = vmatpush.bf16.msra.mxu2 %v673_v2 }
  0x41   : > { %p969_p0 = pnand %p968_p13, %p964_p7 }
  0x43   : > { %469 = vmatpush.bf16.msra.mxu0 %v653_v6 }
  0x44   : > { %495 = vmatpush.bf16.msra.mxu2 %v661_v11 }
  0x47   : > { %470 = vmatpush.bf16.msra.mxu0 %v641_v15 }
  0x9d   : > { %v268_v18 = vpop.xlane.xlu0 %267 }
  0x9e   : > { %v276_v19 = vmul.f32 %v1171_v17, %v268_v18  ;;  %v648_v18 = vld [vmem:[#allocation7 + $0x8] sm:$0xf] }
  0xa0   : > { %v1174_v20 = vsub.f32 %v264_v1, %v276_v19  ;;  %v669_v1 = vor.u32 %v743_v60, %v666_v62  ;;  %v739_v19 = vld [vmem:[#allocation7 + $0x10] sm:$0xf0] }
  0xa1   : > { %v649_v22 = vor.u32 %v739_v19, %v648_v18 }
  0xa2   : > { %v278_v21 = vmul.f32 %v1174_v20, %v1174_v20  ;;  %481 = vmatpush.bf16.msra.mxu1 %v669_v1 }
  0xa3   : > { %496 = vmatpush.bf16.msra.mxu2 %v649_v22 }
  0xa4   : > { %279 = vadd.xlane.f32.xlu0 %v278_v21  ;;  %v645_v21 = vor.u32 %v737_v14, %v642_v16 }
  0xa6   : > { %482 = vmatpush.bf16.msra.mxu1 %v657_v10 }
  0xaa   : > { %483 = vmatpush.bf16.msra.mxu1 %v645_v21 }
 0x117   : > { %v280_v23 = vpop.xlane.xlu0 %279 }
 0x118   : > { %v281_v24 = vmul.f32 %v280_v23, %v1171_v17  ;;  %v850_v17 = vld [vmem:[%s1224_s2] ss:$0 sm:$0xff] }
 0x11a   : > { %v282_v25 = vadd.f32 1e-05, %v281_v24 }
 0x11c   : > { %853 = vrsqrt.f32 %v282_v25  ;;  %vm289_vm2 = vweird.f32 %v282_v25 }
 0x122   : > { %v854_v26 = vpop.eup %853 }
 0x123   : > { %v284_v27 = vmul.f32 %v854_v26, %v282_v25  ;;  %vm290_vm1 = vweird.f32 %v854_v26 }
 0x124   : > { %vm291_vm3 = vmor %vm289_vm2, %vm290_vm1 }
 0x125   : > { %v285_v28 = vmul.f32 %v854_v26, %v284_v27 }
 0x127   : > { %v286_v29 = vmul.f32 0.5, %v285_v28 }
 0x129   : > { %v287_v30 = vsub.f32 1.5, %v286_v29 }
 0x12b   : > { %v288_v31 = vmul.f32 %v854_v26, %v287_v30 }
 0x12d   : > { %v292_v33 = vsel %vm291_vm3, %v854_v26, %v288_v31 }
 0x12e   : > { %v293_v34 = vmul.f32 %v292_v33, %v1174_v20 }
 0x130   : > { %v297_v35 = vmul.f32 %v849_v32, %v293_v34 }
 0x132   : > { %v301_v36 = vadd.f32 %v850_v17, %v297_v35 }
 0x134   : > { %v302_v37 = vpack.c.bf16 %v301_v36, %v301_v36 }
 0x136   : > { %471 = vmatmul.bf16.vlgmr.msra.gmra.mxu0 %v302_v37  ;;  %484 = vmatmul.bf16.vlgmr.msra.gmra.mxu1 %v302_v37 }
 0x137   : > { %497 = vmatmul.bf16.vlgmr.msra.gmra.mxu2 %v302_v37 }
 0x1b3   : > { %v472_v38 = vpop.f32.mrf.mxu0  ;;  %v485_v39 = vpop.f32.mrf.mxu1 }
 0x1b4   : > { %v502_v40 = vpack.c.bf16 %v485_v39, %v472_v38 }
 0x1b6   : > { %504 = vst [vmem:[%s262_s7] sm:$0xff] %v502_v40 }
 0x1ba   : > { %v498_v20 = vpop.f32.mrf.mxu2 }
 0x1bb   : > { %v503_v41 = vpack.c.bf16 %v498_v20, %v498_v20  ;;  %v474_v42 = vpop.f32.mrf.mxu0  ;;  %v487_v43 = vpop.f32.mrf.mxu1 }
 0x1bd   : > { %505 = vst [vmem:[%s262_s7 + $0x8] sm:$0xf] %v503_v41 }
 0x1be   : > { %972 = shalt.err (!%p969_p0)
}
 0x1bf   : > { %773 = dma.vmem_to_hbm [thread:$0]  (%p1139_p2), %s523_s8, 192, %s525_s9, %s507_s18  }
 0x1c2   : > { %v500_v44 = vpop.f32.mrf.mxu2 }
 0x1c3 PF: > { %s536_s12 = sand.u32 1, %s1011_s15   ;;  %p787_p4 = pnand %p631_p8, %p1110_p5 }
 0x1c4   : > { %s537_s29 = scalar_lea.sflag [#allocation4], %s536_s12 }
 0x1c5   : > { %p788_p6 = pneg %p787_p4 }
 0x1c7   : > { %1006 = dma.done.wait (%p788_p6), %s537_s29, 192  }
 0x1c8   : > { %1008 = vsyncadd (%p788_p6), %s537_s29, 4294967104  ;;  %s21_s20 = sadd.s32 1, %s1031_s20   ;;  %s1232_s15 = smov %s1015_s16 }
 0x1c9   : > { %p18_p9 = scmp.ge.s32.totalorder %s21_s20, 4   ;;  %s1233_s16 = smov %s1019_s17 }
 0x1ca   : > { %s1234_s17 = smov %s1149_s30  ;;  %s1235_s18 = smov %s1027_s19 }
 0x1cb   : > { %s1236_s19 = smov %s1238_s13  ;;  %20 = sbr.rel (!%p18_p9) target bundleno = 7 (0x7), region = 89 }
 0x1d0   :  { %543 = vsyncpa [#allocation3], 1 }
 0x1d1   :  { %545 = vsyncpa [#allocation3 + $0x1], 1 }
 0x1d2   :  { %546 = vsyncpa [#allocation6], 1 }
 0x1d3   :  { %547 = vsyncpa [#allocation4], 1 }
 0x1d4   :  { %549 = vsyncpa [#allocation4 + $0x1], 1 }

// kernel: tpu_custom_call.1
= control target key start
LH: loop header
LB: loop body
LE: loop exit
PB: predicated region body
PF: predicated region fallthrough
CT: control target
= control target key end

     0   :  { %9 = vsyncpa [#allocation3], 0  ;;  %s1222_s0 = inlined_call_operand.hbm [shape: bf16[2,8,128], index: 0, kind: input, shape index: {}]   ;;  %s1223_s1 = inlined_call_operand.hbm [shape: f32[1,128], index: 1, kind: input, shape index: {}]   ;;  %s1224_s2 = inlined_call_operand.vmem [shape: f32[1,128], index: 2, kind: input, shape index: {}]   ;;  %s1225_s3 = inlined_call_operand.hbm [shape: bf16[128,384], index: 3, kind: input, shape index: {}]   ;;  %s1226_s4 = inlined_call_operand.hbm [shape: bf16[2,8,384], index: 4, kind: output, shape index: {}]  }
   0x1   :  { %11 = vsyncpa [#allocation3 + $0x1], 0 }
   0x2   :  { %12 = vsyncpa [#allocation6], 0 }
   0x3   :  { %13 = vsyncpa [#allocation4], 0 }
   0x4   :  { %15 = vsyncpa [#allocation4 + $0x1], 0  ;;  %s1063_s15 = smov 0   ;;  %s1065_s16 = smov 0  }
   0x5   :  { %s1067_s17 = smov 0   ;;  %s1069_s18 = smov 0  }
   0x6   :  { %s1071_s19 = smov 0   ;;  %s1073_s20 = smov 0  }
   0x7 LB: > { %s626_s21 = sadd.s32 4294967295, %s1031_s20   ;;  %s627_s22 = sadd.s32 4294967294, %s1031_s20   ;;  %s1031_s20 = sphi %s1073_s20, %s21_s20   ;;  %s1027_s19 = sphi %s1071_s19, %s1236_s19   ;;  %s1023_s18 = sphi %s1069_s18, %s1235_s18   ;;  %s1019_s17 = sphi %s1067_s17, %s1234_s17   ;;  %s1015_s16 = sphi %s1065_s16, %s1233_s16   ;;  %s1011_s15 = sphi %s1063_s15, %s1232_s15  }
   0x8   : > { %p55_p0 = scmp.ne.s32.totalorder %s1015_s16, %s1011_s15  ;;  %p1099_p1 = scmp.eq.s32.totalorder %s626_s21, 0 }
   0x9   : > { %p150_p2 = scmp.eq.s32.totalorder %s627_s22, 1  ;;  %p628_p4 = scmp.ge.s32.totalorder %s1031_s20, 1 }
   0xa   : > { %p1105_p3 = por %p1099_p1, %p55_p0  ;;  %p157_p6 = scmp.lt.s32.totalorder %s1031_s20, 3 }
   0xb   : > { %p1110_p5 = por %p150_p2, %p55_p0  ;;  %s169_s28 = sshll.u32 %s1223_s1, 4  ;;  %s170_s28 = int_to_ptr.hbm [resolvable:$true] %s169_s28 }
   0xc   : > { %p1118_p7 = pnand %p628_p4, %p157_p6  ;;  %p631_p8 = scmp.ge.s32.totalorder %s1031_s20, 2 }
   0xd   : > { %s1033_s30 = smov [#allocation5]   ;;  %s183_s8 = sshll.u32 %s1225_s3, 4  ;;  %s184_s8 = int_to_ptr.hbm [resolvable:$true] %s183_s8 }
   0xe   : > { %p775_p9 = pneg %p1118_p7  ;;  %s171_s5 = sshll.u32 %s1033_s30, 4  ;;  %s172_s5 = int_to_ptr.vmem [resolvable:$true] %s171_s5 }
   0xf   : > { %s1034_s9 = smov [#allocation7]   ;;  %s1035_s11 = smov 192  }
  0x10   : > { %p776_p10 = pnand %p775_p9, %p1099_p1  ;;  %s185_s10 = sshll.u32 %s1034_s9, 4  ;;  %s186_s10 = int_to_ptr.vmem [resolvable:$true] %s185_s10 }
  0x11   : > { %s1036_s12 = smov 12   ;;  %p144_p11 = scmp.eq.s32.totalorder %s626_s21, 1 }
  0x12   : > { %778 = dma.hbm_to_vmem [thread:$0]  (!%p776_p10), %s170_s28, 16, %s172_s5, [#allocation6]  }
  0x13   : > { %781 = dma.hbm_to_vmem [thread:$0]  (!%p776_p10), %s184_s8, 3072, %s186_s10, [#allocation6], %s1035_s11, %s1035_s11, %s1036_s12  }
  0x14   : > { %s33_s13 = sadd.s32 1, %s1027_s19  ;;  %s42_s14 = sadd.s32 1, %s1019_s17 }
  0x15   : > { %p35_p12 = scmp.ge.s32.totalorder %s33_s13, 2  ;;  %p49_p13 = scmp.ne.s32.totalorder %s1019_s17, %s1015_s16 }
  0x16   : > { %p50_p0 = scmp.eq.s32.totalorder %s1031_s20, 0  ;;  %p792_p4 = scmp.lt.s32.totalorder %s1031_s20, 2 }
  0x17   : > { %s1238_s13 = smov (%p35_p12, %s33_s13), 0  ;;  %p1139_p2 = por %p144_p11, %p49_p13 }
  0x18   : > { %s37_s26 = ssub.s32 %s1027_s19, %s1238_s13  ;;  %s199_s27 = sand.u32 1, %s1019_s17  }
  0x19   : > { %p40_p6 = scmp.eq.s32.totalorder %s37_s26, 0  ;;  %p51_p9 = por %p50_p0, %p49_p13 }
  0x1a   : > { %s632_s28 = sshll.u32 %s199_s27, 2  ;;  %s633_s21 = sshll.u32 %s1027_s19, 2 }
  0x1b   : > { %s1149_s30 = scalar_select %p40_p6, %s1019_s17, %s42_s14  }
  0x1c   : > { %s208_s7 = scalar_lea.hbm %s1222_s0, %s633_s21  ;;  %s203_s9 = scalar_lea.vmem [#allocation2], %s632_s28 }
  0x1d   : > { %s210_s8 = sshll.u32 %s208_s7, 4  ;;  %s212_s10 = sshll.u32 %s203_s9, 4  ;;  %s211_s8 = int_to_ptr.hbm [resolvable:$true] %s210_s8  ;;  %s213_s10 = int_to_ptr.vmem [resolvable:$true] %s212_s10 }
  0x1e   : > { %p783_p10 = pnand %p792_p4, %p51_p9  ;;  %s200_s11 = scalar_lea.sflag [#allocation3], %s199_s27 }
  0x1f   : > { %221 = sbr.rel (%p1118_p7) target bundleno = 451 (0x1c3), region = 36  ;;  %s1159_s12 = sand.u32 (!%p1118_p7), 1, %s1015_s16  }
  0x20   : > { %785 = dma.hbm_to_vmem [thread:$0]  (!%p783_p10), %s211_s8, 64, %s213_s10, %s200_s11  }
  0x21   : > { %s635_s14 = sshll.u32 (!%p1118_p7), %s1159_s12, 2  ;;  %s224_s26 = scalar_lea.sflag (!%p1118_p7), [#allocation3], %s1159_s12 }
  0x22   : > { %s227_s21 = scalar_lea.vmem (!%p1118_p7), [#allocation2], %s635_s14 }
  0x24   : > { %998 = dma.done.wait (%p1105_p3), %s224_s26, 64  }
  0x25   : > { %1000 = vsyncadd (%p1105_p3), %s224_s26, 4294967232 }
  0x26   : > { %1002 = dma.done.wait (%p1099_p1), [#allocation6], 3088  }
  0x27   : > { %1004 = vsyncadd (%p1099_p1), [#allocation6], 4294964208  ;;  %v263_v0 = vld [vmem:[%s227_s21] sm:$0xf]  ;;  %v1037_v2 = vmov 128.0   ;;  %s761_s29 = smul.u32 12, %s1159_s12 }
  0x28   : > { %v264_v1 = vunpack.c.l.bf16 %v263_v0  ;;  %851 = vrcp.f32 %v1037_v2  ;;  %v724_v3 = vld [vmem:[#allocation7 + $0xa8] sm:$0xf]  ;;  %v759_v4 = vld [vmem:[#allocation7 + $0xb0] sm:$0xf0]  ;;  %v758_v5 = vld [vmem:[#allocation7 + $0xac] sm:$0xf] }
  0x29   : > { %v725_v6 = vor.u32 %v759_v4, %v724_v3  ;;  %v726_v7 = vld [vmem:[#allocation7 + $0xb4] sm:$0xf0]  ;;  %v732_v8 = vld [vmem:[#allocation7 + $0xb0] sm:$0xf]  ;;  %v760_v9 = vld [vmem:[#allocation7 + $0xb8] sm:$0xf0] }
  0x2a   : > { %267 = vadd.xlane.f32.xlu0 %v264_v1  ;;  %v729_v10 = vor.u32 %v758_v5, %v726_v7  ;;  %v733_v11 = vor.u32 %v760_v9, %v732_v8  ;;  %v712_v22 = vld [vmem:[#allocation7 + $0x90] sm:$0xf]  ;;  %v756_v23 = vld [vmem:[#allocation7 + $0x98] sm:$0xf0]  ;;  %v755_v24 = vld [vmem:[#allocation7 + $0x94] sm:$0xf] }
  0x2b   : > { %463 = vmatpush.bf16.msra.mxu0 %v725_v6  ;;  %v713_v25 = vor.u32 %v756_v23, %v712_v22  ;;  %v714_v26 = vld [vmem:[#allocation7 + $0x9c] sm:$0xf0]  ;;  %v720_v27 = vld [vmem:[#allocation7 + $0x98] sm:$0xf]  ;;  %v757_v28 = vld [vmem:[#allocation7 + $0xa0] sm:$0xf0] }
  0x2c   : > { %476 = vmatpush.bf16.msra.mxu1 %v729_v10  ;;  %489 = vmatpush.bf16.msra.mxu2 %v733_v11  ;;  %v717_v29 = vor.u32 %v755_v24, %v714_v26  ;;  %v721_v30 = vor.u32 %v757_v28, %v720_v27  ;;  %v700_v31 = vld [vmem:[#allocation7 + $0x78] sm:$0xf]  ;;  %v753_v32 = vld [vmem:[#allocation7 + $0x80] sm:$0xf0]  ;;  %v752_v33 = vld [vmem:[#allocation7 + $0x7c] sm:$0xf] }
  0x2d   : > { %v701_v34 = vor.u32 %v753_v32, %v700_v31  ;;  %v702_v35 = vld [vmem:[#allocation7 + $0x84] sm:$0xf0]  ;;  %v708_v36 = vld [vmem:[#allocation7 + $0x80] sm:$0xf]  ;;  %v754_v37 = vld [vmem:[#allocation7 + $0x88] sm:$0xf0] }
  0x2e   : > { %v852_v12 = vpop.eup %851  ;;  %v705_v38 = vor.u32 %v752_v33, %v702_v35  ;;  %v709_v39 = vor.u32 %v754_v37, %v708_v36  ;;  %v688_v40 = vld [vmem:[#allocation7 + $0x60] sm:$0xf]  ;;  %v750_v41 = vld [vmem:[#allocation7 + $0x68] sm:$0xf0]  ;;  %v749_v42 = vld [vmem:[#allocation7 + $0x64] sm:$0xf] }
  0x2f   : > { %v270_v13 = vmul.f32 128.0, %v852_v12  ;;  %vm274_vm0 = vweird.f32 %v852_v12  ;;  %464 = vmatpush.bf16.msra.mxu0 %v713_v25  ;;  %v689_v43 = vor.u32 %v750_v41, %v688_v40  ;;  %v690_v44 = vld [vmem:[#allocation7 + $0x6c] sm:$0xf0]  ;;  %v696_v45 = vld [vmem:[#allocation7 + $0x68] sm:$0xf]  ;;  %s762_s27 = smul.u32 12, %s1023_s18 }
  0x30   : > { %477 = vmatpush.bf16.msra.mxu1 %v717_v29  ;;  %490 = vmatpush.bf16.msra.mxu2 %v721_v30  ;;  %v751_v46 = vld [vmem:[#allocation7 + $0x70] sm:$0xf0]  ;;  %v693_v47 = vor.u32 %v749_v42, %v690_v44  ;;  %v676_v49 = vld [vmem:[#allocation7 + $0x48] sm:$0xf]  ;;  %v746_v51 = vld [vmem:[#allocation7 + $0x4c] sm:$0xf] }
  0x31   : > { %v271_v14 = vsub.f32 1.0, %v270_v13  ;;  %v697_v48 = vor.u32 %v751_v46, %v696_v45  ;;  %v747_v50 = vld [vmem:[#allocation7 + $0x50] sm:$0xf0]  ;;  %v678_v53 = vld [vmem:[#allocation7 + $0x54] sm:$0xf0]  ;;  %s520_s6 = scalar_lea.hbm %s1226_s4, %s762_s27  ;;  %s262_s7 = scalar_lea.vmem [#allocation8], %s761_s29 }
  0x32   : > { %v677_v52 = vor.u32 %v747_v50, %v676_v49  ;;  %v684_v54 = vld [vmem:[#allocation7 + $0x50] sm:$0xf]  ;;  %v748_v55 = vld [vmem:[#allocation7 + $0x58] sm:$0xf0]  ;;  %v681_v56 = vor.u32 %v746_v51, %v678_v53  ;;  %v743_v60 = vld [vmem:[#allocation7 + $0x34] sm:$0xf] }
  0x33   : > { %v272_v15 = vmul.f32 %v852_v12, %v271_v14  ;;  %465 = vmatpush.bf16.msra.mxu0 %v701_v34  ;;  %v685_v57 = vor.u32 %v748_v55, %v684_v54  ;;  %v664_v58 = vld [vmem:[#allocation7 + $0x30] sm:$0xf]  ;;  %v744_v59 = vld [vmem:[#allocation7 + $0x38] sm:$0xf0]  ;;  %v666_v62 = vld [vmem:[#allocation7 + $0x3c] sm:$0xf0] }
  0x34   : > { %478 = vmatpush.bf16.msra.mxu1 %v705_v38  ;;  %491 = vmatpush.bf16.msra.mxu2 %v709_v39  ;;  %v665_v61 = vor.u32 %v744_v59, %v664_v58  ;;  %v672_v63 = vld [vmem:[#allocation7 + $0x38] sm:$0xf]  ;;  %v745_v0 = vld [vmem:[#allocation7 + $0x40] sm:$0xf0]  ;;  %v740_v5 = vld [vmem:[#allocation7 + $0x1c] sm:$0xf] }
  0x35   : > { %v273_v16 = vadd.f32 %v852_v12, %v272_v15  ;;  %v673_v2 = vor.u32 %v745_v0, %v672_v63  ;;  %v652_v3 = vld [vmem:[#allocation7 + $0x18] sm:$0xf]  ;;  %v741_v4 = vld [vmem:[#allocation7 + $0x20] sm:$0xf0]  ;;  %v654_v7 = vld [vmem:[#allocation7 + $0x24] sm:$0xf0] }
  0x36   : > { %v653_v6 = vor.u32 %v741_v4, %v652_v3  ;;  %v660_v8 = vld [vmem:[#allocation7 + $0x20] sm:$0xf]  ;;  %v742_v9 = vld [vmem:[#allocation7 + $0x28] sm:$0xf0]  ;;  %v657_v10 = vor.u32 %v740_v5, %v654_v7  ;;  %v737_v14 = vld [vmem:[#allocation7 + $0x4] sm:$0xf] }
  0x37   : > { %v1171_v17 = vsel %vm274_vm0, %v852_v12, %v273_v16  ;;  %466 = vmatpush.bf16.msra.mxu0 %v689_v43  ;;  %v661_v11 = vor.u32 %v742_v9, %v660_v8  ;;  %v640_v12 = vld [vmem:[#allocation7] sm:$0xf]  ;;  %v738_v13 = vld [vmem:[#allocation7 + $0x8] sm:$0xf0]  ;;  %v642_v16 = vld [vmem:[#allocation7 + $0xc] sm:$0xf0] }
  0x38   : > { %479 = vmatpush.bf16.msra.mxu1 %v693_v47  ;;  %492 = vmatpush.bf16.msra.mxu2 %v697_v48  ;;  %v641_v15 = vor.u32 %v738_v13, %v640_v12  ;;  %v849_v32 = vld [vmem:[#allocation5] ss:$0 sm:$0xff]  ;;  %s522_s8 = sshll.u32 %s262_s7, 4  ;;  %s524_s9 = sshll.u32 %s520_s6, 4  ;;  %s523_s8 = int_to_ptr.vmem [resolvable:$true] %s522_s8  ;;  %s525_s9 = int_to_ptr.hbm [resolvable:$true] %s524_s9 }
  0x39   : > { %s507_s18 = scalar_lea.sflag [#allocation4], %s1159_s12  ;;  %s959_s10 = sshra.s32 %s525_s9, 4  ;;  %s960_s10 = int_to_ptr.hbm [resolvable:$true] %s959_s10 }
  0x3a   : > { %s961_s11 = scalar_lea.hbm %s960_s10, 12  ;;  %s965_s21 = scalar_lea.hbm %s1226_s4, 24 }
  0x3b   : > { %467 = vmatpush.bf16.msra.mxu0 %v677_v52  ;;  %p962_p1 = scmp.ne.s32.totalorder %s960_s10, %s961_s11  ;;  %p966_p11 = scmp.lt.s32.totalorder %s960_s10, %s1226_s4 }
  0x3c   : > { %480 = vmatpush.bf16.msra.mxu1 %v681_v56  ;;  %493 = vmatpush.bf16.msra.mxu2 %v685_v57  ;;  %p967_p12 = scmp.lt.s32.totalorder %s965_s21, %s961_s11 }
  0x3d   : > { %p963_p3 = pnand %p962_p1, %p1139_p2 }
  0x3e   : > { %p968_p13 = por %p967_p12, %p966_p11 }
  0x3f   : > { %468 = vmatpush.bf16.msra.mxu0 %v665_v61  ;;  %p964_p7 = pneg %p963_p3 }
  0x40   : > { %494 = vmatpush.bf16.msra.mxu2 %v673_v2 }
  0x41   : > { %p969_p0 = pnand %p968_p13, %p964_p7 }
  0x43   : > { %469 = vmatpush.bf16.msra.mxu0 %v653_v6 }
  0x44   : > { %495 = vmatpush.bf16.msra.mxu2 %v661_v11 }
  0x47   : > { %470 = vmatpush.bf16.msra.mxu0 %v641_v15 }
  0x9d   : > { %v268_v18 = vpop.xlane.xlu0 %267 }
  0x9e   : > { %v276_v19 = vmul.f32 %v1171_v17, %v268_v18  ;;  %v648_v18 = vld [vmem:[#allocation7 + $0x8] sm:$0xf] }
  0xa0   : > { %v1174_v20 = vsub.f32 %v264_v1, %v276_v19  ;;  %v669_v1 = vor.u32 %v743_v60, %v666_v62  ;;  %v739_v19 = vld [vmem:[#allocation7 + $0x10] sm:$0xf0] }
  0xa1   : > { %v649_v22 = vor.u32 %v739_v19, %v648_v18 }
  0xa2   : > { %v278_v21 = vmul.f32 %v1174_v20, %v1174_v20  ;;  %481 = vmatpush.bf16.msra.mxu1 %v669_v1 }
  0xa3   : > { %496 = vmatpush.bf16.msra.mxu2 %v649_v22 }
  0xa4   : > { %279 = vadd.xlane.f32.xlu0 %v278_v21  ;;  %v645_v21 = vor.u32 %v737_v14, %v642_v16 }
  0xa6   : > { %482 = vmatpush.bf16.msra.mxu1 %v657_v10 }
  0xaa   : > { %483 = vmatpush.bf16.msra.mxu1 %v645_v21 }
 0x117   : > { %v280_v23 = vpop.xlane.xlu0 %279 }
 0x118   : > { %v281_v24 = vmul.f32 %v280_v23, %v1171_v17  ;;  %v850_v17 = vld [vmem:[%s1224_s2] ss:$0 sm:$0xff] }
 0x11a   : > { %v282_v25 = vadd.f32 1e-05, %v281_v24 }
 0x11c   : > { %853 = vrsqrt.f32 %v282_v25  ;;  %vm289_vm2 = vweird.f32 %v282_v25 }
 0x122   : > { %v854_v26 = vpop.eup %853 }
 0x123   : > { %v284_v27 = vmul.f32 %v854_v26, %v282_v25  ;;  %vm290_vm1 = vweird.f32 %v854_v26 }
 0x124   : > { %vm291_vm3 = vmor %vm289_vm2, %vm290_vm1 }
 0x125   : > { %v285_v28 = vmul.f32 %v854_v26, %v284_v27 }
 0x127   : > { %v286_v29 = vmul.f32 0.5, %v285_v28 }
 0x129   : > { %v287_v30 = vsub.f32 1.5, %v286_v29 }
 0x12b   : > { %v288_v31 = vmul.f32 %v854_v26, %v287_v30 }
 0x12d   : > { %v292_v33 = vsel %vm291_vm3, %v854_v26, %v288_v31 }
 0x12e   : > { %v293_v34 = vmul.f32 %v292_v33, %v1174_v20 }
 0x130   : > { %v297_v35 = vmul.f32 %v849_v32, %v293_v34 }
 0x132   : > { %v301_v36 = vadd.f32 %v850_v17, %v297_v35 }
 0x134   : > { %v302_v37 = vpack.c.bf16 %v301_v36, %v301_v36 }
 0x136   : > { %471 = vmatmul.bf16.vlgmr.msra.gmra.mxu0 %v302_v37  ;;  %484 = vmatmul.bf16.vlgmr.msra.gmra.mxu1 %v302_v37 }
 0x137   : > { %497 = vmatmul.bf16.vlgmr.msra.gmra.mxu2 %v302_v37 }
 0x1b3   : > { %v472_v38 = vpop.f32.mrf.mxu0  ;;  %v485_v39 = vpop.f32.mrf.mxu1 }
 0x1b4   : > { %v502_v40 = vpack.c.bf16 %v485_v39, %v472_v38 }
 0x1b6   : > { %504 = vst [vmem:[%s262_s7] sm:$0xff] %v502_v40 }
 0x1ba   : > { %v498_v20 = vpop.f32.mrf.mxu2 }
 0x1bb   : > { %v503_v41 = vpack.c.bf16 %v498_v20, %v498_v20  ;;  %v474_v42 = vpop.f32.mrf.mxu0  ;;  %v487_v43 = vpop.f32.mrf.mxu1 }
 0x1bd   : > { %505 = vst [vmem:[%s262_s7 + $0x8] sm:$0xf] %v503_v41 }
 0x1be   : > { %972 = shalt.err (!%p969_p0)
}
 0x1bf   : > { %773 = dma.vmem_to_hbm [thread:$0]  (%p1139_p2), %s523_s8, 192, %s525_s9, %s507_s18  }
 0x1c2   : > { %v500_v44 = vpop.f32.mrf.mxu2 }
 0x1c3 PF: > { %s536_s12 = sand.u32 1, %s1011_s15   ;;  %p787_p4 = pnand %p631_p8, %p1110_p5 }
 0x1c4   : > { %s537_s29 = scalar_lea.sflag [#allocation4], %s536_s12 }
 0x1c5   : > { %p788_p6 = pneg %p787_p4 }
 0x1c7   : > { %1006 = dma.done.wait (%p788_p6), %s537_s29, 192  }
 0x1c8   : > { %1008 = vsyncadd (%p788_p6), %s537_s29, 4294967104  ;;  %s21_s20 = sadd.s32 1, %s1031_s20   ;;  %s1232_s15 = smov %s1015_s16 }
 0x1c9   : > { %p18_p9 = scmp.ge.s32.totalorder %s21_s20, 4   ;;  %s1233_s16 = smov %s1019_s17 }
 0x1ca   : > { %s1234_s17 = smov %s1149_s30  ;;  %s1235_s18 = smov %s1027_s19 }
 0x1cb   : > { %s1236_s19 = smov %s1238_s13  ;;  %20 = sbr.rel (!%p18_p9) target bundleno = 7 (0x7), region = 89 }
 0x1d0   :  { %543 = vsyncpa [#allocation3], 1 }
 0x1d1   :  { %545 = vsyncpa [#allocation3 + $0x1], 1 }
 0x1d2   :  { %546 = vsyncpa [#allocation6], 1 }
 0x1d3   :  { %547 = vsyncpa [#allocation4], 1 }
 0x1d4   :  { %549 = vsyncpa [#allocation4 + $0x1], 1 }

</bundles_post_ra>
